<compile_context>
chip_gen: v6e
topology: v6e:2x2x1
jax: 0.10.0
libtpu: 0.0.40
codegen_flags: <defaults>
</compile_context>

<pallas_src>
import jax
import jax.numpy as jnp
from jax import lax
from jax.experimental import pallas as pl
from jax.experimental.pallas import tpu as pltpu


def _round_up(x, m):
    return ((x + m - 1) // m) * m


def _pad_to(a, shape):
    pads = [(0, t - s) for s, t in zip(a.shape, shape)]
    if any(p[1] for p in pads):
        return jnp.pad(a, pads)
    return a


def _vmem_limit_bytes():
    """VMEM scoped limit with headroom for Mosaic scratch (works on v5e/v6e/v7x)."""
    try:
        phys = pltpu.get_tpu_info().vmem_capacity_bytes
    except Exception:
        phys = 64 << 20  # conservative: v7x physical VMEM per TensorCore
    return int(min(phys * 3 // 4, 100 << 20))


# ---------------- kernels ----------------
def _linear_single_kernel(x_ref, w_ref, b_ref, o_ref):
    # x: (tm, K)  w: (tn, K)  (PyTorch layout; transpose folded into the MXU)
    acc = lax.dot_general(
        x_ref[...], w_ref[...],
        dimension_numbers=(((1,), (1,)), ((), ())),
        preferred_element_type=jnp.float32)
    o_ref[...] = (acc + b_ref[...]).astype(o_ref.dtype)


def _linear_acc_kernel(x_ref, w_ref, b_ref, o_ref, acc_ref):
    @pl.when(pl.program_id(2) == 0)
    def _():
        acc_ref[...] = jnp.zeros_like(acc_ref)

    acc_ref[...] += lax.dot_general(
        x_ref[...], w_ref[...],
        dimension_numbers=(((1,), (1,)), ((), ())),
        preferred_element_type=jnp.float32)

    @pl.when(pl.program_id(2) == pl.num_programs(2) - 1)
    def _():
        o_ref[...] = (acc_ref[...] + b_ref[...]).astype(o_ref.dtype)


# ---------------- wrapper ----------------
def regressor_forward(x, weight, bias, *, tm=512, tn=512, tk=512):
    """y = x @ weight.T + bias, matching torch.nn.Linear.

    x:      (B, D_in)
    weight: (D_out, D_in)   -- PyTorch layout (never transposed in the wrapper)
    bias:   (D_out,)
    """
    B, d_in = x.shape
    d_out, d_in_w = weight.shape
    assert d_in_w == d_in and bias.shape == (d_out,)

    itemsize = jnp.dtype(x.dtype).itemsize
    vmem_limit = _vmem_limit_bytes()

    flops = 2 * B * d_in * d_out
    bytes_accessed = itemsize * (B * d_in + d_out * d_in + d_out + B * d_out)
    cost = pl.CostEstimate(flops=flops, transcendentals=0,
                           bytes_accessed=bytes_accessed)

    m_pad = _round_up(B, 8)
    k_pad = _round_up(d_in, 128)
    n_pad = _round_up(d_out, 128)

    b2d = bias.reshape(1, d_out)

    # ---------- small path: whole problem resident in VMEM, no grid ----------
    single_bytes = (itemsize * (m_pad * k_pad + n_pad * k_pad + n_pad)
                    + 4 * m_pad * n_pad)
    if single_bytes <= (8 << 20):
        x_p = _pad_to(x, (m_pad, k_pad))
        w_p = _pad_to(weight, (n_pad, k_pad))
        b_p = _pad_to(b2d, (1, n_pad))
        out_p = pl.pallas_call(
            _linear_single_kernel,
            out_shape=jax.ShapeDtypeStruct((m_pad, n_pad), x.dtype),
            in_specs=[pl.BlockSpec(memory_space=pltpu.MemorySpace.VMEM)] * 3,
            out_specs=pl.BlockSpec(memory_space=pltpu.MemorySpace.VMEM),
            compiler_params=pltpu.CompilerParams(vmem_limit_bytes=vmem_limit),
            cost_estimate=cost,
        )(x_p, w_p, b_p)
        return out_p[:B, :d_out]

    # ---------- tiled paths ----------
    tm_eff = min(tm, m_pad)          # multiple of 8
    tn_eff = min(tn, n_pad)          # multiple of 128
    grid_m = pl.cdiv(B, tm_eff)
    grid_n = pl.cdiv(d_out, tn_eff)

    # Can the entire K dimension live in each step's tiles?  (double-buffered
    # x/w tiles + double-buffered out tile + bias)
    collapsed_step_bytes = (2 * itemsize * k_pad * (tm_eff + tn_eff)
                            + 2 * itemsize * tm_eff * tn_eff
                            + 2 * itemsize * tn_eff)

    if collapsed_step_bytes <= (vmem_limit * 2) // 3:
        # --- K collapsed: grid (M/tm, N/tn), no accumulator, no pl.when ---
        # Only K needs zero-fill for correctness (and only when d_in % 128 != 0);
        # ragged M/N edges are handled by Pallas partial blocks.
        x_p = _pad_to(x, (B, k_pad))
        w_p = _pad_to(weight, (d_out, k_pad))
        return pl.pallas_call(
            _linear_single_kernel,
            out_shape=jax.ShapeDtypeStruct((B, d_out), x.dtype),
            grid_spec=pltpu.PrefetchScalarGridSpec(
                num_scalar_prefetch=0,
                grid=(grid_m, grid_n),
                in_specs=[
                    pl.BlockSpec((tm_eff, k_pad), lambda i, j: (i, 0)),   # x
                    pl.BlockSpec((tn_eff, k_pad), lambda i, j: (j, 0)),   # weight
                    pl.BlockSpec((1, tn_eff), lambda i, j: (0, j)),       # bias
                ],
                out_specs=pl.BlockSpec((tm_eff, tn_eff), lambda i, j: (i, j)),
            ),
            compiler_params=pltpu.CompilerParams(
                dimension_semantics=("parallel", "parallel"),
                vmem_limit_bytes=vmem_limit),
            cost_estimate=cost,
        )(x_p, w_p, b2d)

    # --- huge-K fallback: 3-D grid with f32 VMEM accumulator, K axis last ---
    tk_eff = min(tk, k_pad)                       # multiple of 128
    k_pad_t = _round_up(d_in, tk_eff)             # zero-fill K up to tk multiple
    grid_k = k_pad_t // tk_eff
    x_p = _pad_to(x, (B, k_pad_t))
    w_p = _pad_to(weight, (d_out, k_pad_t))
    return pl.pallas_call(
        _linear_acc_kernel,
        out_shape=jax.ShapeDtypeStruct((B, d_out), x.dtype),
        grid_spec=pltpu.PrefetchScalarGridSpec(
            num_scalar_prefetch=0,
            grid=(grid_m, grid_n, grid_k),
            in_specs=[
                pl.BlockSpec((tm_eff, tk_eff), lambda i, j, k: (i, k)),   # x
                pl.BlockSpec((tn_eff, tk_eff), lambda i, j, k: (j, k)),   # weight
                pl.BlockSpec((1, tn_eff), lambda i, j, k: (0, j)),        # bias
            ],
            out_specs=pl.BlockSpec((tm_eff, tn_eff), lambda i, j, k: (i, j)),
            scratch_shapes=[pltpu.VMEM((tm_eff, tn_eff), jnp.float32)],
        ),
        compiler_params=pltpu.CompilerParams(
            dimension_semantics=("parallel", "parallel", "arbitrary"),
            vmem_limit_bytes=vmem_limit),
        cost_estimate=cost,
    )(x_p, w_p, b2d)


if __name__ == "__main__":
    key = jax.random.PRNGKey(0)

    # --- 1. Small shapes consistent with the module (single-block path) ---
    batch, input_dim, output_dim = 8, 32, 16
    kx, kw, kb = jax.random.split(key, 3)
    x = jax.random.normal(kx, (batch, input_dim), dtype=jnp.float32)
    bound = 1.0 / (input_dim ** 0.5)        # nn.Linear-style init bound
    weight = jax.random.uniform(kw, (output_dim, input_dim),
                                minval=-bound, maxval=bound, dtype=jnp.float32)
    bias = jax.random.uniform(kb, (output_dim,),
                              minval=-bound, maxval=bound, dtype=jnp.float32)

    y = regressor_forward(x, weight, bias)
    jax.block_until_ready(y)
    y_ref = jnp.dot(x, weight.T, precision=lax.Precision.HIGHEST) + bias
    assert y.shape == (batch, output_dim)
    assert jnp.allclose(y, y_ref, atol=1e-4, rtol=1e-4), "small path mismatch"

    # --- 2. Medium shapes -> tiled, K collapsed, ragged M/N edge blocks ---
    Bx, Din, Dout = 1500, 1000, 1200
    kx2, kw2, kb2 = jax.random.split(jax.random.PRNGKey(1), 3)
    x2 = jax.random.normal(kx2, (Bx, Din), dtype=jnp.float32)
    w2 = jax.random.normal(kw2, (Dout, Din), dtype=jnp.float32) * 0.02
    b2 = jax.random.normal(kb2, (Dout,), dtype=jnp.float32)
    y2 = regressor_forward(x2, w2, b2)
    jax.block_until_ready(y2)
    y2_ref = jnp.dot(x2, w2.T, precision=lax.Precision.HIGHEST) + b2
    assert y2.shape == (Bx, Dout)
    assert jnp.allclose(y2, y2_ref, atol=2e-3, rtol=2e-3), "collapsed-K path mismatch"

    # --- 3. Very large K -> 3-D grid with f32 accumulator over the K axis ---
    Bx3, Din3, Dout3 = 256, 16000, 640
    kx3, kw3, kb3 = jax.random.split(jax.random.PRNGKey(2), 3)
    x3 = jax.random.normal(kx3, (Bx3, Din3), dtype=jnp.float32)
    w3 = jax.random.normal(kw3, (Dout3, Din3), dtype=jnp.float32) * 0.02
    b3 = jax.random.normal(kb3, (Dout3,), dtype=jnp.float32)
    y3 = regressor_forward(x3, w3, b3)
    jax.block_until_ready(y3)
    y3_ref = jnp.dot(x3, w3.T, precision=lax.Precision.HIGHEST) + b3
    assert y3.shape == (Bx3, Dout3)
    assert jnp.allclose(y3, y3_ref, atol=5e-3, rtol=5e-3), "acc path mismatch"

    print("KERNEL_OK")
</pallas_src>

<mosaic_0001>
module attributes {stable_mosaic.version = 11 : i64} {
  func.func @_linear_single_kernel(%arg0: memref<8x128xf32, #tpu.memory_space<vmem>>, %arg1: memref<128x128xf32, #tpu.memory_space<vmem>>, %arg2: memref<1x128xf32, #tpu.memory_space<vmem>>, %arg3: memref<8x128xf32, #tpu.memory_space<vmem>>) attributes {dimension_semantics = [], scalar_prefetch = 0 : i64, scratch_operands = 0 : i64, tpu.core_type = #tpu.core_type<tc>} {
    %c0 = arith.constant 0 : index
    %c0_0 = arith.constant 0 : index
    %0 = vector.load %arg0[%c0, %c0_0] : memref<8x128xf32, #tpu.memory_space<vmem>>, vector<8x128xf32>
    %c0_1 = arith.constant 0 : index
    %c0_2 = arith.constant 0 : index
    %1 = vector.load %arg1[%c0_1, %c0_2] : memref<128x128xf32, #tpu.memory_space<vmem>>, vector<128x128xf32>
    %cst = arith.constant dense<0.000000e+00> : vector<8x128xf32>
    %2 = tpu.matmul %0, %1, %cst {dimension_numbers = #tpu.dot_dimension_numbers<[1], [1], [0], [0], [0, 0, 1, 0], [], []>} : vector<8x128xf32>, vector<128x128xf32>, vector<8x128xf32> -> vector<8x128xf32>
    %c0_3 = arith.constant 0 : index
    %c0_4 = arith.constant 0 : index
    %3 = vector.load %arg2[%c0_3, %c0_4] : memref<1x128xf32, #tpu.memory_space<vmem>>, vector<1x128xf32>
    %4 = vector.broadcast %3 : vector<1x128xf32> to vector<8x128xf32>
    %5 = arith.addf %2, %4 : vector<8x128xf32>
    %c0_5 = arith.constant 0 : index
    %c0_6 = arith.constant 0 : index
    %6 = vector.load %arg3[%c0_5, %c0_6] : memref<8x128xf32, #tpu.memory_space<vmem>>, vector<8x128xf32>
    tpu.vector_store %arg3[%c0_5, %c0_6], %5 {strides = array<i32>} : memref<8x128xf32, #tpu.memory_space<vmem>>, vector<8x128xf32>,
    return
  }
}

</mosaic_0001>

<bundles_post_ra>
// kernel: tpu_custom_call.1
= control target key start
LH: loop header
LB: loop body
LE: loop exit
PB: predicated region body
PF: predicated region fallthrough
CT: control target
= control target key end

     0   :  { %8 = vsyncpa [#allocation3], 0  ;;  %s317_s0 = inlined_call_operand.hbm [shape: f32[8,128], index: 0, kind: input, shape index: {}]   ;;  %s318_s1 = inlined_call_operand.hbm [shape: f32[128,128], index: 1, kind: input, shape index: {}]   ;;  %s319_s2 = inlined_call_operand.vmem [shape: f32[1,128], index: 2, kind: input, shape index: {}]   ;;  %s320_s3 = inlined_call_operand.hbm [shape: f32[8,128], index: 3, kind: output, shape index: {}]  }
   0x1   :  { %9 = vsyncpa [#allocation6], 0 }
   0x2   :  { %10 = vsyncpa [#allocation4], 0  ;;  %s278_s12 = smov [#allocation2]   ;;  %s279_s14 = smov [#allocation5]  }
   0x3   :  { %s17_s13 = sshll.u32 %s278_s12, 4  ;;  %s26_s15 = sshll.u32 %s279_s14, 4  ;;  %s18_s13 = int_to_ptr.vmem [resolvable:$true] %s17_s13  ;;  %s27_s15 = int_to_ptr.vmem [resolvable:$true] %s26_s15 }
   0x4   :  { %s220_s16 = scalar_lea.vmem %s18_s13, 128  ;;  %p225_p1 = scmp.lt.s32.totalorder %s18_s13, %s18_s13 }
   0x5   :  { %p221_p0 = scmp.ne.s32.totalorder %s18_s13, %s220_s16  ;;  %p226_p2 = scmp.lt.s32.totalorder %s220_s16, %s220_s16 }
   0x7   :  { %p227_p3 = por %p226_p2, %p225_p1 }
   0x9   :  { %p228_p4 = pnand %p227_p3, %p221_p0 }
   0xb   :  { %231 = shalt.err (!%p228_p4)
}
   0xc   :  { %20 = dma.hbm_to_vmem [thread:$0]  %s317_s0, 128, %s18_s13, [#allocation3]  }
   0xd   :  { %s240_s19 = scalar_lea.vmem %s27_s15, 2048  ;;  %p245_p6 = scmp.lt.s32.totalorder %s27_s15, %s27_s15 }
   0xe   :  { %p241_p5 = scmp.ne.s32.totalorder %s27_s15, %s240_s19  ;;  %p246_p7 = scmp.lt.s32.totalorder %s240_s19, %s240_s19 }
  0x10   :  { %p247_p8 = por %p246_p7, %p245_p6 }
  0x12   :  { %p248_p9 = pnand %p247_p8, %p241_p5 }
  0x14   :  { %251 = shalt.err (!%p248_p9)
}
  0x15   :  { %s280_s20 = smov 128   ;;  %s281_s21 = smov 8  }
  0x16   :  { %32 = dma.hbm_to_vmem [thread:$0]  %s318_s1, 2048, %s27_s15, [#allocation6], %s280_s20, %s280_s20, %s281_s21  }
  0x17   :  { %272 = dma.done.wait [#allocation3], 128  }
  0x18   :  { %273 = vsyncadd [#allocation3], 4294967168 }
  0x19   :  { %274 = dma.done.wait [#allocation6], 2048  }
  0x1a   :  { %275 = vsyncadd [#allocation6], 4294965248  ;;  %v282_v0 = vmov 0.0   ;;  %vm283_vm0 = vmmov 0   ;;  %v57_v1 = vld [vmem:[#allocation5 + $0x78] sm:$0xff]  ;;  %v56_v2 = vld [vmem:[#allocation5 + $0x70] sm:$0xff] }
  0x1b   :  { %170 = vmatprep.subr.mxu0 %v282_v0  ;;  %202 = vmatprep.mubr.msk.f32.mxu0 %vm283_vm0, %v282_v0  ;;  %v55_v3 = vld [vmem:[#allocation5 + $0x68] sm:$0xff]  ;;  %v54_v4 = vld [vmem:[#allocation5 + $0x60] sm:$0xff]  ;;  %v53_v5 = vld [vmem:[#allocation5 + $0x58] sm:$0xff]  ;;  %s284_s24 = smov [#allocation7]  }
  0x1c   :  { %171 = vmatpush3.xpose.msra.mxu0 %v57_v1  ;;  %v52_v6 = vld [vmem:[#allocation5 + $0x50] sm:$0xff]  ;;  %v51_v7 = vld [vmem:[#allocation5 + $0x48] sm:$0xff]  ;;  %v50_v8 = vld [vmem:[#allocation5 + $0x40] sm:$0xff]  ;;  %s142_s25 = sshll.u32 %s284_s24, 4  ;;  %s143_s25 = int_to_ptr.vmem [resolvable:$true] %s142_s25 }
  0x1d   :  { %172 = vmatprep.subr.mxu0 %v282_v0  ;;  %v49_v9 = vld [vmem:[#allocation5 + $0x38] sm:$0xff]  ;;  %v48_v10 = vld [vmem:[#allocation5 + $0x30] sm:$0xff]  ;;  %v47_v11 = vld [vmem:[#allocation5 + $0x28] sm:$0xff]  ;;  %s252_s26 = scalar_lea.vmem %s143_s25, 128  ;;  %p257_p11 = scmp.lt.s32.totalorder %s143_s25, %s143_s25 }
  0x1e   :  { %v46_v12 = vld [vmem:[#allocation5 + $0x20] sm:$0xff]  ;;  %v45_v13 = vld [vmem:[#allocation5 + $0x18] sm:$0xff]  ;;  %v44_v14 = vld [vmem:[#allocation5 + $0x10] sm:$0xff]  ;;  %p253_p10 = scmp.ne.s32.totalorder %s143_s25, %s252_s26  ;;  %p258_p12 = scmp.lt.s32.totalorder %s252_s26, %s252_s26 }
  0x1f   :  { %v43_v15 = vld [vmem:[#allocation5 + $0x8] sm:$0xff]  ;;  %v42_v16 = vld [vmem:[#allocation5] sm:$0xff]  ;;  %v41_v17 = vld [vmem:[#allocation2] sm:$0xff] }
  0x20   :  { %173 = vmatpush3.xpose.msra.mxu0 %v56_v2  ;;  %v152_v18 = vld [vmem:[%s319_s2] ss:$0 sm:$0xff]  ;;  %p259_p13 = por %p258_p12, %p257_p11 }
  0x21   :  { %174 = vmatprep.subr.mxu0 %v282_v0 }
  0x22   :  { %p260_p0 = pnand %p259_p13, %p253_p10 }
  0x24   :  { %175 = vmatpush3.xpose.msra.mxu0 %v55_v3 }
  0x25   :  { %176 = vmatprep.subr.mxu0 %v282_v0 }
  0x28   :  { %177 = vmatpush3.xpose.msra.mxu0 %v54_v4 }
  0x29   :  { %178 = vmatprep.subr.mxu0 %v282_v0 }
  0x2c   :  { %179 = vmatpush3.xpose.msra.mxu0 %v53_v5 }
  0x2d   :  { %180 = vmatprep.subr.mxu0 %v282_v0 }
  0x30   :  { %181 = vmatpush3.xpose.msra.mxu0 %v52_v6 }
  0x31   :  { %182 = vmatprep.subr.mxu0 %v282_v0 }
  0x34   :  { %183 = vmatpush3.xpose.msra.mxu0 %v51_v7 }
  0x35   :  { %184 = vmatprep.subr.mxu0 %v282_v0 }
  0x38   :  { %185 = vmatpush3.xpose.msra.mxu0 %v50_v8 }
  0x39   :  { %186 = vmatprep.subr.mxu0 %v282_v0 }
  0x3c   :  { %187 = vmatpush3.xpose.msra.mxu0 %v49_v9 }
  0x3d   :  { %188 = vmatprep.subr.mxu0 %v282_v0 }
  0x40   :  { %189 = vmatpush3.xpose.msra.mxu0 %v48_v10 }
  0x41   :  { %190 = vmatprep.subr.mxu0 %v282_v0 }
  0x44   :  { %191 = vmatpush3.xpose.msra.mxu0 %v47_v11 }
  0x45   :  { %192 = vmatprep.subr.mxu0 %v282_v0 }
  0x48   :  { %193 = vmatpush3.xpose.msra.mxu0 %v46_v12 }
  0x49   :  { %194 = vmatprep.subr.mxu0 %v282_v0 }
  0x4c   :  { %195 = vmatpush3.xpose.msra.mxu0 %v45_v13 }
  0x4d   :  { %196 = vmatprep.subr.mxu0 %v282_v0 }
  0x50   :  { %197 = vmatpush3.xpose.msra.mxu0 %v44_v14 }
  0x51   :  { %198 = vmatprep.subr.mxu0 %v282_v0 }
  0x54   :  { %199 = vmatpush3.xpose.msra.mxu0 %v43_v15 }
  0x55   :  { %200 = vmatprep.subr.mxu0 %v282_v0 }
  0x58   :  { %201 = vmatpush3.xpose.msra.mxu0 %v42_v16 }
  0x5b   :  { %203 = vmatmul.mubr.f32.vlgmr.msra.gmra.mxu0 %v41_v17 }
 0x11b   :  { %v131_v19 = vpop.f32.mrf.mxu0 }
 0x11c   :  { %v132_v20 = vadd.f32 %v152_v18, %v131_v19 }
 0x11d   :  { %v204_v21 = vpop.f32.mrf.mxu0 }
 0x11e   :  { %135 = vst [vmem:[#allocation7] sm:$0xff] %v132_v20 }
 0x11f   :  { %263 = shalt.err (!%p260_p0)
}
 0x120   :  { %145 = dma.vmem_to_hbm [thread:$0]  %s143_s25, 128, %s320_s3, [#allocation4]  }
 0x121   :  { %276 = dma.done.wait [#allocation4], 128  }
 0x122   :  { %277 = vsyncadd [#allocation4], 4294967168 }
 0x123   :  { %149 = vsyncpa [#allocation3], 1 }
 0x124   :  { %150 = vsyncpa [#allocation6], 1 }
 0x125   :  { %151 = vsyncpa [#allocation4], 1 }

</bundles_post_ra>
